<compile_context>
chip_gen: v7x
topology: tpu7x:2x2x1
jax: 0.10.0
libtpu: 0.0.40
codegen_flags: <defaults>
</compile_context>

<pallas_src>
import math

import jax
import jax.numpy as jnp
from jax import lax
from jax.experimental import pallas as pl
from jax.experimental.pallas import tpu as pltpu


def _tpu_generation_info():
    """Best-effort hardware query; conservative fallbacks if unavailable."""
    kind = ""
    try:
        kind = jax.devices()[0].device_kind.lower()
    except Exception:
        pass
    is_v7 = ("v7" in kind)
    is_v6 = ("v6" in kind) or ("trillium" in kind)
    is_v5e = ("v5e" in kind) or ("v5 lite" in kind) or ("v5litepod" in kind)

    vmem_phys = None
    try:
        info = pltpu.get_tpu_info()
        vmem_phys = getattr(info, "vmem_capacity_bytes", None)
    except Exception:
        vmem_phys = None
    if vmem_phys is None:
        if is_v7:
            vmem_phys = 64 << 20
        elif is_v6 or is_v5e:
            vmem_phys = 128 << 20
        else:
            vmem_phys = 64 << 20  # unknown chip: be conservative

    return dict(
        vmem_phys=int(vmem_phys),
        num_cores=2 if is_v7 else 1,
        bf16_eup=(is_v6 or is_v7),
        is_v7=is_v7,
        is_v6=is_v6,
        is_v5e=is_v5e,
    )


def _make_qkv_attn_kernel(exp_dtype, compute_dtype, approx_recip):
    def kernel(q_ref, k_ref, v_ref, out_ref):
        # q_ref: (hb, ch, tq)   k_ref/v_ref: (hb, ch, T)   out_ref: (hb, ch, tq)
        hb, ch, _ = q_ref.shape
        kv_len = k_ref.shape[-1]

        q = q_ref[...]
        k = k_ref[...]
        v = v_ref[...]
        if compute_dtype is not None:
            # Optional bf16 compute for f32 inputs (MXU still accumulates f32).
            q = q.astype(compute_dtype)
            k = k.astype(compute_dtype)
            v = v.astype(compute_dtype)

        # Fold the full 1/sqrt(ch) scale into q only (one VPU pass over
        # (ch, tq)); f32 accumulation below makes the reference's two-sided
        # ch**-0.25 scaling (an fp16-overflow guard) unnecessary.
        scale = jnp.asarray(1.0 / math.sqrt(ch), q.dtype)
        qs = q * scale

        # scores[h, t, s] = sum_c q[h, c, t] * k[h, c, s]
        # (contract channel dim of both operands -> MXU-native, no transposes)
        w = lax.dot_general(
            qs, k,
            dimension_numbers=(((1,), (1,)), ((0,), (0,))),
            preferred_element_type=jnp.float32)                  # (hb, tq, T) f32

        # Softmax statistics in f32 (matches the reference's .float()); the
        # exp itself runs in exp_dtype (bf16 on v6e/v7x long-T bf16 layers
        # where the single EUP is the saturating slot; f32 otherwise).
        m = jnp.max(w, axis=-1, keepdims=True)                   # (hb, tq, 1)
        p = jnp.exp((w - m).astype(exp_dtype)).astype(v.dtype)   # (hb, tq, T)

        # Unnormalized output: a[h, c, t] = sum_s v[h, c, s] * p[h, t, s]
        num = lax.dot_general(
            v, p,
            dimension_numbers=(((2,), (2,)), ((0,), (0,))),
            preferred_element_type=jnp.float32)                  # (hb, ch, tq)

        # Row-sum of p, produced directly in lane layout via a 1xT MXU pass
        # (avoids a sublane->lane transpose of a (tq,1) vector).
        ones_row = jnp.ones((hb, 1, kv_len), dtype=p.dtype)
        den = lax.dot_general(
            ones_row, p,
            dimension_numbers=(((2,), (2,)), ((0,), (0,))),
            preferred_element_type=jnp.float32)                  # (hb, 1, tq)

        # Deferred normalization: ch*tq multiplies instead of tq*T; exact
        # reciprocal for f32 outputs, approx (EUP slot) for bf16/f16 outputs.
        out = num * pl.reciprocal(den, approx=approx_recip)
        out_ref[...] = out.astype(out_ref.dtype)

    return kernel


def qkv_attention_legacy(qkv, n_heads, *, q_block=None, heads_per_block=None,
                         allow_bf16_compute=False, kv_buffer_count=None):
    """qkv: [N, H*3*C, T] -> [N, H*C, T]  (matches QKVAttentionLegacy.forward)."""
    bs, width, length = qkv.shape
    assert width % (3 * n_heads) == 0
    ch = width // (3 * n_heads)
    B = bs * n_heads

    info = _tpu_generation_info()

    # (B, 3, ch, T): q/k/v selected by BlockSpec index maps (aligned slices).
    qkv_r = qkv.reshape(B, 3, ch, length)

    # ---- Query tile -------------------------------------------------------
    # Lane-dense tile, VMEM-capped (tq, T) score tile. v7x (64 MiB VMEM/TC):
    # cap tq at 256 for T>=2048; v5e/v6e (128 MiB): allow up to 1024.
    if q_block is None:
        if info["is_v7"] and length >= 2048:
            cands = (256, 128)
        elif (info["is_v6"] or info["is_v5e"]) and length >= 2048:
            cands = (1024, 512, 256, 128)
        else:
            cands = (512, 256, 128)
        q_block = length
        for cand in cands:
            if length % cand == 0:
                q_block = cand
                break
    tq = min(q_block, length)
    assert length % tq == 0
    n_q_tiles = length // tq

    # ---- Heads per grid step ---------------------------------------------
    # Small/medium-T layers are HBM-bandwidth bound (~0.5-1.5us of DMA per
    # head vs ~0.35us fixed per-step overhead), so batch heads aggressively;
    # keep B//hb >= #TensorCores so the megacore split has work for each core.
    if heads_per_block is None:
        heads_per_block = 1
        if length <= 256:
            hb_cands = (16, 8, 4, 2)
        elif length <= 512:
            hb_cands = (4, 2)
        else:
            hb_cands = ()
        for cand in hb_cands:
            if B % cand == 0 and (B // cand) >= info["num_cores"]:
                heads_per_block = cand
                break
    hb = heads_per_block
    assert B % hb == 0

    grid = (B // hb, n_q_tiles)
    itemsize = qkv.dtype.itemsize

    # ---- dtype policy ------------------------------------------------------
    in_is_f32 = (qkv.dtype == jnp.float32)
    compute_dtype = jnp.bfloat16 if (allow_bf16_compute and in_is_f32) else None
    p_dtype = compute_dtype if compute_dtype is not None else qkv.dtype
    # bf16 exp only where the EUP supports it natively, on long-T layers,
    # and only when p is bf16 anyway (so no extra precision is lost).
    use_bf16_exp = info["bf16_eup"] and (p_dtype == jnp.bfloat16) and length >= 1024
    exp_dtype = jnp.bfloat16 if use_bf16_exp else jnp.float32
    approx_recip = not (qkv.dtype == jnp.float32)

    # ---- Advisory cost (actual HBM traffic: K/V are block-resident across qi)
    cost = pl.CostEstimate(
        flops=4 * B * ch * length * length,
        transcendentals=B * length * length,
        bytes_accessed=itemsize * (3 * B * ch * length   # q, k, v read once
                                   + B * ch * length))   # out written once

    # ---- VMEM budget --------------------------------------------------------
    # Double-buffered q/k/v/out tiles + f32 score/prob temps, capped at ~75%
    # of the chip's physical per-core VMEM (48 MiB v7x, ~96 MiB v5e/v6e).
    io_bytes = 2 * hb * ch * (2 * tq + 2 * length) * itemsize
    scratch_bytes = 3 * hb * tq * length * 4 + 4 * hb * ch * tq * 4
    vmem_cap = (info["vmem_phys"] * 3) // 4
    vmem_limit = int(min(max(2 * (io_bytes + scratch_bytes), 32 << 20), vmem_cap))

    # ---- BlockSpecs ---------------------------------------------------------
    kv_kwargs = {}
    if kv_buffer_count is not None:
        # Optional deeper K/V pipelining; only useful if xprof shows exposed
        # DMA at head-group boundaries (n_q_tiles == 1 small-T layers).
        kv_kwargs["pipeline_mode"] = pl.Buffered(kv_buffer_count)

    q_spec = pl.BlockSpec((hb, None, ch, tq), lambda b, qi: (b, 0, 0, qi))
    k_spec = pl.BlockSpec((hb, None, ch, length), lambda b, qi: (b, 1, 0, 0),
                          **kv_kwargs)
    v_spec = pl.BlockSpec((hb, None, ch, length), lambda b, qi: (b, 2, 0, 0),
                          **kv_kwargs)
    o_spec = pl.BlockSpec((hb, ch, tq), lambda b, qi: (b, 0, qi))

    kernel = _make_qkv_attn_kernel(exp_dtype, compute_dtype, approx_recip)

    out = pl.pallas_call(
        kernel,
        out_shape=jax.ShapeDtypeStruct((B, ch, length), qkv.dtype),
        grid_spec=pltpu.PrefetchScalarGridSpec(
            num_scalar_prefetch=0,
            grid=grid,
            in_specs=[q_spec, k_spec, v_spec],
            out_specs=o_spec,
        ),
        compiler_params=pltpu.CompilerParams(
            # head axis parallel (megacore split candidate), qi axis arbitrary
            # so K/V blocks stay resident across query tiles.
            dimension_semantics=("parallel", "arbitrary"),
            vmem_limit_bytes=vmem_limit),
        cost_estimate=cost,
    )(qkv_r, qkv_r, qkv_r)

    return out.reshape(bs, n_heads * ch, length)


def _reference(qkv, n_heads):
    """Plain-JAX transcription of the PyTorch forward, for checking."""
    bs, width, length = qkv.shape
    ch = width // (3 * n_heads)
    qkv_r = qkv.reshape(bs * n_heads, 3 * ch, length)
    q, k, v = qkv_r[:, :ch], qkv_r[:, ch:2 * ch], qkv_r[:, 2 * ch:]
    scale = 1.0 / math.sqrt(math.sqrt(ch))
    w = jnp.einsum('bct,bcs->bts', q * scale, k * scale)
    w = jax.nn.softmax(w.astype(jnp.float32), axis=-1).astype(w.dtype)
    a = jnp.einsum('bts,bcs->bct', w, v)
    return a.reshape(bs, -1, length)


if __name__ == "__main__":
    # Small shapes consistent with the module: N=2, heads=2, ch=8, T=16.
    # QKVAttentionLegacy has no learnable parameters (only n_heads).
    n_heads = 2
    bs, ch, length = 2, 8, 16
    width = n_heads * 3 * ch  # 48

    key = jax.random.PRNGKey(0)
    qkv = jax.random.normal(key, (bs, width, length), dtype=jnp.float32)

    out = qkv_attention_legacy(qkv, n_heads)
    out = jax.block_until_ready(out)

    ref = _reference(qkv, n_heads)
    assert out.shape == (bs, n_heads * ch, length), out.shape
    # Tolerance accounts for deferred normalization / scale folding
    # (low-order-bit differences vs. the exact softmax reference).
    assert jnp.allclose(out, ref, atol=2e-3, rtol=2e-3), "mismatch vs reference"

    print("KERNEL_OK")
</pallas_src>

<mosaic_0001>
module attributes {stable_mosaic.version = 11 : i64} {
  func.func @kernel(%arg0: i32, %arg1: i32, %arg2: memref<4x1x8x16xf32, #tpu.memory_space<vmem>>, %arg3: memref<4x1x8x16xf32, #tpu.memory_space<vmem>>, %arg4: memref<4x1x8x16xf32, #tpu.memory_space<vmem>>, %arg5: memref<4x8x16xf32, #tpu.memory_space<vmem>>) attributes {dimension_semantics = [#tpu.dimension_semantics<parallel>, #tpu.dimension_semantics<arbitrary>], iteration_bounds = array<i64: 1, 1>, scalar_prefetch = 0 : i64, scratch_operands = 0 : i64, tpu.core_type = #tpu.core_type<tc>, window_params = [{transform_indices = @transform_0, window_bounds = array<i64: 4, 1, 8, 16>}, {transform_indices = @transform_1, window_bounds = array<i64: 4, 1, 8, 16>}, {transform_indices = @transform_2, window_bounds = array<i64: 4, 1, 8, 16>}, {transform_indices = @transform_3, window_bounds = array<i64: 4, 8, 16>}]} {
    %c0 = arith.constant 0 : index
    %c0_0 = arith.constant 0 : index
    %c0_1 = arith.constant 0 : index
    %c0_2 = arith.constant 0 : index
    %0 = vector.load %arg2[%c0, %c0_0, %c0_1, %c0_2] : memref<4x1x8x16xf32, #tpu.memory_space<vmem>>, vector<4x1x8x16xf32>
    %1 = vector.shape_cast %0 : vector<4x1x8x16xf32> to vector<4x8x16xf32>
    %c0_3 = arith.constant 0 : index
    %c0_4 = arith.constant 0 : index
    %c0_5 = arith.constant 0 : index
    %c0_6 = arith.constant 0 : index
    %2 = vector.load %arg3[%c0_3, %c0_4, %c0_5, %c0_6] : memref<4x1x8x16xf32, #tpu.memory_space<vmem>>, vector<4x1x8x16xf32>
    %3 = vector.shape_cast %2 : vector<4x1x8x16xf32> to vector<4x8x16xf32>
    %c0_7 = arith.constant 0 : index
    %c0_8 = arith.constant 0 : index
    %c0_9 = arith.constant 0 : index
    %c0_10 = arith.constant 0 : index
    %4 = vector.load %arg4[%c0_7, %c0_8, %c0_9, %c0_10] : memref<4x1x8x16xf32, #tpu.memory_space<vmem>>, vector<4x1x8x16xf32>
    %5 = vector.shape_cast %4 : vector<4x1x8x16xf32> to vector<4x8x16xf32>
    %cst = arith.constant 0.353553385 : f32
    %6 = vector.broadcast %cst : f32 to vector<4x8x16xf32>
    %7 = arith.mulf %1, %6 : vector<4x8x16xf32>
    %cst_11 = arith.constant dense<0.000000e+00> : vector<4x16x16xf32>
    %8 = tpu.matmul %7, %3, %cst_11 {dimension_numbers = #tpu.dot_dimension_numbers<[1], [1], [2], [2], [0, 0, 0, 2, 1, 2], [0], [0]>} : vector<4x8x16xf32>, vector<4x8x16xf32>, vector<4x16x16xf32> -> vector<4x16x16xf32>
    %cst_12 = arith.constant dense<0xFF800000> : vector<4x16xf32>
    %9 = vector.multi_reduction <maximumf>, %8, %cst_12 [2] : vector<4x16x16xf32> to vector<4x16xf32>
    %10 = vector.shape_cast %9 : vector<4x16xf32> to vector<4x16x1xf32>
    %11 = vector.broadcast %10 : vector<4x16x1xf32> to vector<4x16x16xf32>
    %12 = arith.subf %8, %11 : vector<4x16x16xf32>
    %13 = math.exp %12 : vector<4x16x16xf32>
    %cst_13 = arith.constant dense<0.000000e+00> : vector<4x8x16xf32>
    %14 = tpu.matmul %5, %13, %cst_13 {dimension_numbers = #tpu.dot_dimension_numbers<[2], [2], [1], [1], [0, 0, 0, 1, 1, 1], [0], [0]>} : vector<4x8x16xf32>, vector<4x16x16xf32>, vector<4x8x16xf32> -> vector<4x8x16xf32>
    %cst_14 = arith.constant 1.000000e+00 : f32
    %15 = vector.broadcast %cst_14 : f32 to vector<4x1x16xf32>
    %cst_15 = arith.constant dense<0.000000e+00> : vector<4x1x16xf32>
    %16 = tpu.matmul %15, %13, %cst_15 {dimension_numbers = #tpu.dot_dimension_numbers<[2], [2], [1], [1], [0, 0, 0, 1, 1, 1], [0], [0]>} : vector<4x1x16xf32>, vector<4x16x16xf32>, vector<4x1x16xf32> -> vector<4x1x16xf32>
    %17 = tpu.reciprocal %16 : vector<4x1x16xf32> -> vector<4x1x16xf32>
    %18 = vector.broadcast %17 : vector<4x1x16xf32> to vector<4x8x16xf32>
    %19 = arith.mulf %14, %18 : vector<4x8x16xf32>
    %c0_16 = arith.constant 0 : index
    %c0_17 = arith.constant 0 : index
    %c0_18 = arith.constant 0 : index
    %20 = vector.load %arg5[%c0_16, %c0_17, %c0_18] : memref<4x8x16xf32, #tpu.memory_space<vmem>>, vector<4x8x16xf32>
    tpu.vector_store %arg5[%c0_16, %c0_17, %c0_18], %19 {strides = array<i32>} : memref<4x8x16xf32, #tpu.memory_space<vmem>>, vector<4x8x16xf32>,
    return
  }
  func.func @transform_0(%arg0: i32, %arg1: i32) -> (i32, i32, i32, i32) {
    %c0_i32 = arith.constant 0 : i32
    %c0_i32_0 = arith.constant 0 : i32
    %c0_i32_1 = arith.constant 0 : i32
    return %arg0, %c0_i32, %c0_i32_0, %arg1 : i32, i32, i32, i32
  }
  func.func @transform_1(%arg0: i32, %arg1: i32) -> (i32, i32, i32, i32) {
    %c1_i32 = arith.constant 1 : i32
    %c0_i32 = arith.constant 0 : i32
    %c0_i32_0 = arith.constant 0 : i32
    %c0_i32_1 = arith.constant 0 : i32
    return %arg0, %c1_i32, %c0_i32, %c0_i32_0 : i32, i32, i32, i32
  }
  func.func @transform_2(%arg0: i32, %arg1: i32) -> (i32, i32, i32, i32) {
    %c2_i32 = arith.constant 2 : i32
    %c0_i32 = arith.constant 0 : i32
    %c0_i32_0 = arith.constant 0 : i32
    %c0_i32_1 = arith.constant 0 : i32
    return %arg0, %c2_i32, %c0_i32, %c0_i32_0 : i32, i32, i32, i32
  }
  func.func @transform_3(%arg0: i32, %arg1: i32) -> (i32, i32, i32) {
    %c0_i32 = arith.constant 0 : i32
    %c0_i32_0 = arith.constant 0 : i32
    return %arg0, %c0_i32, %arg1 : i32, i32, i32
  }
}

</mosaic_0001>

<bundles_post_ra>
// kernel: tpu_custom_call.1
= control target key start
LH: loop header
LB: loop body
LE: loop exit
PB: predicated region body
PF: predicated region fallthrough
CT: control target
= control target key end

     0   :  { %8 = vsyncpa [#allocation3], 0  ;;  %s1713_s0 = inlined_call_operand.hbm [shape: f32[4,3,8,16], index: 0, kind: input, shape index: {}]   ;;  %s1714_s1 = inlined_call_operand.hbm [shape: f32[4,3,8,16], index: 1, kind: input, shape index: {}]   ;;  %s1715_s2 = inlined_call_operand.hbm [shape: f32[4,3,8,16], index: 2, kind: input, shape index: {}]   ;;  %s1716_s3 = inlined_call_operand.hbm [shape: f32[4,8,16], index: 3, kind: output, shape index: {}]  }
   0x1   :  { %9 = vsyncpa [#allocation6], 0 }
   0x2   :  { %10 = vsyncpa [#allocation4], 0  ;;  %s1566_s14 = scalar_lea.hbm %s1714_s1, 128  ;;  %s1532_s15 = smov [#allocation5]  }
   0x3   :  { %s29_s16 = sshll.u32 %s1532_s15, 4  ;;  %s1533_s17 = smov [#allocation2]   ;;  %s30_s16 = int_to_ptr.vmem [resolvable:$true] %s29_s16 }
   0x4   :  { %s16_s18 = sshll.u32 %s1533_s17, 4  ;;  %s1456_s21 = scalar_lea.hbm %s1714_s1, 640  ;;  %s1568_s18 = int_to_ptr.vmem [resolvable:$true] %s16_s18 }
   0x5   :  { %p1433_p0 = scmp.ne.s32.totalorder %s1566_s14, %s1456_s21  ;;  %s1434_s24 = scalar_lea.hbm %s1714_s1, 1536 }
   0x6   :  { %p1435_p1 = scmp.lt.u32.totalorder %s1566_s14, %s1714_s1  ;;  %p1436_p2 = scmp.lt.u32.totalorder %s1434_s24, %s1456_s21 }
   0x7   :  { %p1438_p4 = scmp.lt.u32.totalorder %s1456_s21, %s1566_s14 }
   0x8   :  { %p1437_p3 = por %p1436_p2, %p1435_p1 }
   0xa   :  { %p1439_p5 = por %p1438_p4, %p1437_p3 }
   0xc   :  { %p1440_p6 = pnand %p1439_p5, %p1433_p0 }
   0xe   :  { %1443 = shalt.err (!%p1440_p6)
}
   0xf   :  { %s1444_s27 = scalar_lea.vmem %s30_s16, 512  ;;  %p1449_p8 = scmp.lt.s32.totalorder %s30_s16, %s30_s16 }
  0x10   :  { %p1445_p7 = scmp.ne.s32.totalorder %s30_s16, %s1444_s27  ;;  %p1450_p9 = scmp.lt.s32.totalorder %s1444_s27, %s1444_s27 }
  0x12   :  { %p1451_p10 = por %p1450_p9, %p1449_p8 }
  0x14   :  { %p1452_p11 = pnand %p1451_p10, %p1445_p7 }
  0x16   :  { %1455 = shalt.err (!%p1452_p11)
}
  0x17   :  { %s1534_s28 = smov 384   ;;  %s1535_s29 = smov 128  }
  0x18   :  { %s1536_s30 = smov 8   ;;  %s1457_s5 = scalar_lea.hbm %s1713_s0, 512 }
  0x19   :  { %35 = dma.hbm_to_vmem [thread:$0]  %s1566_s14, 512, %s30_s16, [#allocation6], %s1534_s28, %s1535_s29, %s1536_s30  }
  0x1a   :  { %p1458_p12 = scmp.ne.s32.totalorder %s1713_s0, %s1457_s5  ;;  %s1459_s10 = scalar_lea.hbm %s1713_s0, 1536 }
  0x1b   :  { %p1460_p13 = scmp.lt.u32.totalorder %s1459_s10, %s1457_s5  ;;  %p1461_p0 = scmp.lt.u32.totalorder %s1457_s5, %s1713_s0 }
  0x1d   :  { %p1462_p1 = por %p1461_p0, %p1460_p13 }
  0x1f   :  { %p1463_p2 = pnand %p1462_p1, %p1458_p12 }
  0x21   :  { %1466 = shalt.err (!%p1463_p2)
}
  0x22   :  { %s1467_s13 = scalar_lea.vmem %s1568_s18, 512  ;;  %p1472_p4 = scmp.lt.s32.totalorder %s1568_s18, %s1568_s18 }
  0x23   :  { %p1468_p3 = scmp.ne.s32.totalorder %s1568_s18, %s1467_s13  ;;  %p1473_p5 = scmp.lt.s32.totalorder %s1467_s13, %s1467_s13 }
  0x25   :  { %p1474_p6 = por %p1473_p5, %p1472_p4 }
  0x27   :  { %p1475_p7 = pnand %p1474_p6, %p1468_p3 }
  0x29   :  { %1478 = shalt.err (!%p1475_p7)
}
  0x2a   :  { %22 = dma.hbm_to_vmem [thread:$0]  %s1713_s0, 512, %s1568_s18, [#allocation3], %s1534_s28, %s1535_s29, %s1536_s30  }
  0x2b   :  { %s41_s19 = scalar_lea.hbm %s1715_s2, 256  ;;  %s1537_s20 = smov [#allocation7]  }
  0x2c   :  { %s42_s21 = sshll.u32 %s1537_s20, 4  ;;  %s1503_s24 = scalar_lea.hbm %s1715_s2, 768  ;;  %s43_s21 = int_to_ptr.vmem [resolvable:$true] %s42_s21 }
  0x2d   :  { %p1480_p8 = scmp.ne.s32.totalorder %s41_s19, %s1503_s24  ;;  %s1481_s27 = scalar_lea.hbm %s1715_s2, 1536 }
  0x2e   :  { %p1482_p9 = scmp.lt.u32.totalorder %s41_s19, %s1715_s2  ;;  %p1483_p10 = scmp.lt.u32.totalorder %s1481_s27, %s1503_s24 }
  0x2f   :  { %p1485_p12 = scmp.lt.u32.totalorder %s1503_s24, %s41_s19 }
  0x30   :  { %p1484_p11 = por %p1483_p10, %p1482_p9 }
  0x32   :  { %p1486_p13 = por %p1485_p12, %p1484_p11 }
  0x34   :  { %p1487_p0 = pnand %p1486_p13, %p1480_p8 }
  0x36   :  { %1490 = shalt.err (!%p1487_p0)
}
  0x37   :  { %s1491_s0 = scalar_lea.vmem %s43_s21, 512  ;;  %p1496_p2 = scmp.lt.s32.totalorder %s43_s21, %s43_s21 }
  0x38   :  { %p1492_p1 = scmp.ne.s32.totalorder %s43_s21, %s1491_s0  ;;  %p1497_p3 = scmp.lt.s32.totalorder %s1491_s0, %s1491_s0 }
  0x3a   :  { %p1498_p4 = por %p1497_p3, %p1496_p2 }
  0x3c   :  { %p1499_p5 = pnand %p1498_p4, %p1492_p1 }
  0x3e   :  { %1502 = shalt.err (!%p1499_p5)
}
  0x3f   :  { %48 = dma.hbm_to_vmem [thread:$0]  %s41_s19, 512, %s43_s21, [#allocation6], %s1534_s28, %s1535_s29, %s1536_s30  }
  0x40   :  { %1526 = dma.done.wait [#allocation3], 512  }
  0x41   :  { %1527 = vsyncadd [#allocation3], 4294966784 }
  0x42   :  { %1528 = dma.done.wait [#allocation6], 1024  }
  0x43   :  { %1529 = vsyncadd [#allocation6], 4294966272  ;;  %v58_v0 = vld [vmem:[#allocation2] sm:$0xff]  ;;  %v60_v1 = vld [vmem:[#allocation2 + $0x10] sm:$0xff]  ;;  %vm106_vm0 = vcmask 64512   ;;  %vm527_vm1 = vcmask 130048  }
  0x44   :  { %v70_v2 = vmul.f32 0.35355338, %v58_v0  ;;  %v72_v3 = vmul.f32 0.35355338, %v60_v1  ;;  %v59_v4 = vld [vmem:[#allocation2 + $0x8] sm:$0xff]  ;;  %v61_v5 = vld [vmem:[#allocation2 + $0x18] sm:$0xff]  ;;  %vm1648_vm3 = vmpackc.low %vm527_vm1, %vm527_vm1 }
  0x45   :  { %v71_v6 = vmul.f32 0.35355338, %v59_v4  ;;  %v73_v7 = vmul.f32 0.35355338, %v61_v5  ;;  %v62_v8 = vld [vmem:[#allocation5] sm:$0xff]  ;;  %v64_v9 = vld [vmem:[#allocation5 + $0x10] sm:$0xff] }
  0x46   :  { %74 = vxpose.xlu0.b32.start.end [1/1] (short) (narrow) %v70_v2, 16  ;;  %301 = vxpose.xlu1.b32.start.end [1/1] (short) (narrow) %v72_v3, 16  ;;  %v63_v10 = vld [vmem:[#allocation5 + $0x8] sm:$0xff]  ;;  %v65_v11 = vld [vmem:[#allocation5 + $0x18] sm:$0xff]  ;;  %v1538_v36 = vmov 0.0|0.0   ;;  %vm1539_vm2 = vmmov 0  }
  0x47   :  { %1289 = vmatprep.subr.mxu0 %v62_v8  ;;  %1294 = vmatprep.subr.mxu1 %v63_v10  ;;  %v1540_v37 = vmov 0.0   ;;  %v66_v2 = vld [vmem:[#allocation7] sm:$0xff]  ;;  %s1542_s2 = smov [#allocation8]  }
  0x48   :  { %1290 = vmatpush3.msra.mxu0 %v62_v8  ;;  %1295 = vmatpush3.msra.mxu1 %v63_v10  ;;  %v67_v10 = vld [vmem:[#allocation7 + $0x8] sm:$0xff]  ;;  %s1208_s18 = sshll.u32 %s1542_s2, 4  ;;  %s1209_s18 = int_to_ptr.vmem [resolvable:$true] %s1208_s18 }
  0x49   :  { %1299 = vmatprep.subr.mxu0 %v64_v9  ;;  %1304 = vmatprep.subr.mxu1 %v65_v11  ;;  %s1504_s28 = scalar_lea.vmem %s1209_s18, 512  ;;  %p1509_p7 = scmp.lt.s32.totalorder %s1209_s18, %s1209_s18 }
  0x4a   :  { %p1505_p6 = scmp.ne.s32.totalorder %s1209_s18, %s1504_s28  ;;  %p1510_p8 = scmp.lt.s32.totalorder %s1504_s28, %s1504_s28 }
  0x4b   :  { %188 = vxpose.xlu0.b32.start.end [1/1] (short) (narrow) %v71_v6, 16  ;;  %414 = vxpose.xlu1.b32.start.end [1/1] (short) (narrow) %v73_v7, 16 }
  0x4c   :  { %p1511_p9 = por %p1510_p8, %p1509_p7 }
  0x4e   :  { %p1512_p10 = pnand %p1511_p9, %p1505_p6 }
  0xc6   :  { %v90_v12 = vpop.trf.xlu0  ;;  %v317_v13 = vpop.trf.xlu1 }
  0xc7   :  { %1291 = vmatprep.mubr.msk.f32.mxu0 %vm106_vm0, %v90_v12 }
  0xca   :  { %v91_v14 = vpop.trf.xlu0  ;;  %v318_v15 = vpop.trf.xlu1 }
  0xcb   :  { %1292 = vmatmul.mubr.msk.f32.vlgmr.msra.gmra.mrb[0].mxu0 %vm106_vm0, %v91_v14  ;;  %v69_v14 = vld [vmem:[#allocation7 + $0x18] sm:$0xff] }
  0xcc   :  { %1300 = vmatpush3.msra.mxu0 %v64_v9  ;;  %1301 = vmatprep.mubr.msk.f32.mxu0 %vm106_vm0, %v317_v13  ;;  %v68_v13 = vld [vmem:[#allocation7 + $0x10] sm:$0xff] }
  0xcd   :  { %1365 = vmatprep.subr.bf16.mxu0 %v1538_v36 }
  0xce   :  { %v204_v16 = vpop.trf.xlu0  ;;  %v430_v17 = vpop.trf.xlu1 }
  0xcf   :  { %1296 = vmatprep.mubr.msk.f32.mxu1 %vm106_vm0, %v204_v16  ;;  %1302 = vmatmul.mubr.msk.f32.vlgmr.msra.gmra.mrb[2].mxu0 %vm106_vm0, %v318_v15  ;;  %v1541_v15 = vmov 1.0  }
  0xd0   :  { %1313 = vmatprep.mubr.msk.f32.mxu0 %vm1539_vm2, %v1540_v37 }
  0xd2   :  { %v205_v18 = vpop.trf.xlu0  ;;  %v431_v19 = vpop.trf.xlu1 }
  0xd3   :  { %1297 = vmatmul.mubr.msk.f32.vlgmr.msra.gmra.mrb[0].mxu1 %vm106_vm0, %v205_v18 }
  0xd4   :  { %1305 = vmatpush3.msra.mxu1 %v65_v11  ;;  %1306 = vmatprep.mubr.msk.f32.mxu1 %vm106_vm0, %v430_v17 }
  0xd5   :  { %1369 = vmatprep.subr.bf16.mxu1 %v1538_v36 }
  0xd7   :  { %1307 = vmatmul.mubr.msk.f32.vlgmr.msra.gmra.mrb[2].mxu1 %vm106_vm0, %v431_v19 }
  0xd8   :  { %1320 = vmatprep.mubr.msk.f32.mxu1 %vm1539_vm2, %v1540_v37 }
 0x19e   :  { %v1293_v20 = vpop.f32.mrb[0].mxu0 }
 0x19f   :  { %v179_v21 = vpop.f32.mrb[1].mxu0  ;;  %v531_v22 = vsel %vm527_vm1, %v1293_v20, -inf }
 0x1a0   :  { %532 = vmax.xlane.f32.xlu1 %v531_v22  ;;  %v528_v23 = vsel %vm527_vm1, %v179_v21, -inf }
 0x1a1   :  { %529 = vmax.xlane.f32.xlu0 %v528_v23 }
 0x1a2   :  { %v1303_v24 = vpop.f32.mrb[2].mxu0 }
 0x1a3   :  { %v405_v25 = vpop.f32.mrb[3].mxu0  ;;  %v543_v34 = vsel %vm527_vm1, %v1303_v24, -inf }
 0x1a4   :  { %v540_v26 = vsel %vm527_vm1, %v405_v25, -inf }
 0x1a5   :  { %541 = vmax.xlane.f32.xlu0 %v540_v26 }
 0x1a6   :  { %v1298_v27 = vpop.f32.mrb[0].mxu1 }
 0x1a7   :  { %v292_v28 = vpop.f32.mrb[1].mxu1  ;;  %v537_v29 = vsel %vm527_vm1, %v1298_v27, -inf }
 0x1a8   :  { %538 = vmax.xlane.f32.xlu1 %v537_v29  ;;  %v534_v32 = vsel %vm527_vm1, %v292_v28, -inf }
 0x1aa   :  { %v1308_v30 = vpop.f32.mrb[2].mxu1 }
 0x1ab   :  { %v518_v31 = vpop.f32.mrb[3].mxu1  ;;  %v549_v35 = vsel %vm527_vm1, %v1308_v30, -inf }
 0x1ac   :  { %535 = vmax.xlane.f32.xlu1 %v534_v32  ;;  %v546_v33 = vsel %vm527_vm1, %v518_v31, -inf }
 0x1ad   :  { %547 = vmax.xlane.f32.xlu0 %v546_v33 }
 0x1b0   :  { %544 = vmax.xlane.f32.xlu1 %v543_v34 }
 0x1b4   :  { %550 = vmax.xlane.f32.xlu1 %v549_v35 }
 0x22d   :  { %v533_v38 = vpop.xlane.xlu1 %532 }
 0x22e   :  { %v553_v39 = vsub.f32 %v1293_v20, %v533_v38  ;;  %v530_v40 = vpop.xlane.xlu0 %529 }
 0x22f   :  { %v552_v41 = vsub.f32 %v179_v21, %v530_v40 }
 0x230   :  { %v562_v42 = vmul.f32 1.442695, %v553_v39 }
 0x231   :  { %v560_v43 = vmul.f32 1.442695, %v552_v41 }
 0x232   :  { %1408 = vpow2.f32 %v562_v42  ;;  %v542_v45 = vpop.xlane.xlu0 %541 }
 0x233   :  { %1410 = vpow2.f32 %v560_v43  ;;  %v556_v47 = vsub.f32 %v405_v25, %v542_v45  ;;  %v1179_v25 = vlaneseq }
 0x235   :  { %v539_v44 = vpop.xlane.xlu1 %538  ;;  %v568_v55 = vmul.f32 1.442695, %v556_v47 }
 0x236   :  { %v555_v46 = vsub.f32 %v1298_v27, %v539_v44  ;;  %v1180_v27 = vshrl.u32 %v1179_v25, 7 }
 0x238   :  { %v566_v48 = vmul.f32 1.442695, %v555_v46 }
 0x239   :  { %v536_v49 = vpop.xlane.xlu1 %535 }
 0x23a   :  { %v554_v50 = vsub.f32 %v292_v28, %v536_v49  ;;  %v548_v51 = vpop.xlane.xlu0 %547  ;;  %1412 = vpow2.f32 %v566_v48 }
 0x23b   :  { %v558_v56 = vsub.f32 %v518_v31, %v548_v51 }
 0x23c   :  { %v1409_v52 = vpop.eup %1408  ;;  %v564_v53 = vmul.f32 1.442695, %v554_v50 }
 0x23d   :  { %v1411_v54 = vpop.eup %1410  ;;  %v545_v57 = vpop.xlane.xlu1 %544  ;;  %v572_v62 = vmul.f32 1.442695, %v558_v56 }
 0x23e   :  { %1414 = vpow2.f32 %v564_v53  ;;  %v557_v59 = vsub.f32 %v1303_v24, %v545_v57  ;;  %v1366_v60 = vpack.c.bf16 %v1409_v52, %v1411_v54 }
 0x23f   :  { %1416 = vpow2.f32 %v568_v55 }
 0x240   :  { %v570_v61 = vmul.f32 1.442695, %v557_v59  ;;  %1368 = vmatpush3.bf16.xpose.msk.msra.mxu0 %vm1648_vm3, %v1366_v60 }
 0x241   :  { %v551_v63 = vpop.xlane.xlu1 %550  ;;  %1373 = vmatprep.subr.bf16.mxu0 %v1538_v36 }
 0x242   :  { %1418 = vpow2.f32 %v570_v61  ;;  %v559_v0 = vsub.f32 %v1308_v30, %v551_v63  ;;  %v1181_v30 = vsub.s32 0, %v1180_v27 }
 0x243   :  { %1420 = vpow2.f32 %v572_v62 }
 0x244   :  { %v574_v1 = vmul.f32 1.442695, %v559_v0  ;;  %v1413_v3 = vpop.eup %1412 }
 0x246   :  { %1422 = vpow2.f32 %v574_v1 }
 0x247   :  { %1314 = vmatmul.mubr.msk.f32.vlgmr.msra.gmra.mrb[4].mxu0 %vm527_vm1, %v66_v2 }
 0x248   :  { %v1415_v4 = vpop.eup %1414  ;;  %1327 = vmatprep.mubr.msk.f32.mxu0 %vm1539_vm2, %v1540_v37 }
 0x249   :  { %v1370_v5 = vpack.c.bf16 %v1413_v3, %v1415_v4  ;;  %v1417_v6 = vpop.eup %1416 }
 0x24b   :  { %1372 = vmatpush3.bf16.xpose.msk.msra.mxu1 %vm1648_vm3, %v1370_v5 }
 0x24c   :  { %v1419_v7 = vpop.eup %1418  ;;  %1377 = vmatprep.subr.bf16.mxu1 %v1538_v36 }
 0x24d   :  { %v1374_v8 = vpack.c.bf16 %v1419_v7, %v1417_v6  ;;  %v1421_v9 = vpop.eup %1420 }
 0x24f   :  { %1376 = vmatpush3.bf16.xpose.msk.msra.mxu0 %vm1648_vm3, %v1374_v8 }
 0x250   :  { %v1423_v11 = vpop.eup %1422  ;;  %1381 = vmatprep.subr.bf16.mxu0 %v1538_v36 }
 0x251   :  { %v1378_v12 = vpack.c.bf16 %v1423_v11, %v1421_v9 }
 0x252   :  { %1321 = vmatmul.mubr.msk.f32.vlgmr.msra.gmra.mrb[4].mxu1 %vm527_vm1, %v67_v10 }
 0x253   :  { %1380 = vmatpush3.bf16.xpose.msk.msra.mxu1 %vm1648_vm3, %v1378_v12  ;;  %1334 = vmatprep.mubr.msk.f32.mxu1 %vm1539_vm2, %v1540_v37 }
 0x254   :  { %1385 = vmatprep.subr.bf16.mxu1 %v1538_v36 }
 0x256   :  { %1328 = vmatmul.mubr.msk.f32.vlgmr.msra.gmra.mrb[6].mxu0 %vm527_vm1, %v68_v13 }
 0x257   :  { %1384 = vmatpush3.bf16.xpose.msk.msra.mxu0 %vm1648_vm3, %v1366_v60  ;;  %1341 = vmatprep.mubr.msk.f32.mxu0 %vm1539_vm2, %v1540_v37 }
 0x258   :  { %1389 = vmatprep.subr.bf16.mxu0 %v1538_v36 }
 0x25a   :  { %1335 = vmatmul.mubr.msk.f32.vlgmr.msra.gmra.mrb[6].mxu1 %vm527_vm1, %v69_v14 }
 0x25b   :  { %1388 = vmatpush3.bf16.xpose.msk.msra.mxu1 %vm1648_vm3, %v1370_v5  ;;  %1348 = vmatprep.mubr.msk.f32.mxu1 %vm1539_vm2, %v1540_v37 }
 0x25c   :  { %1393 = vmatprep.subr.bf16.mxu1 %v1538_v36 }
 0x25e   :  { %1342 = vmatmul.mubr.msk.f32.vlgmr.msra.gmra.mrb[8].mxu0 %vm527_vm1, %v1541_v15 }
 0x25f   :  { %1392 = vmatpush3.bf16.xpose.msk.msra.mxu0 %vm1648_vm3, %v1374_v8  ;;  %1355 = vmatprep.mubr.msk.f32.mxu0 %vm1539_vm2, %v1540_v37 }
 0x262   :  { %1349 = vmatmul.mubr.msk.f32.vlgmr.msra.gmra.mrb[8].mxu1 %vm527_vm1, %v1541_v15 }
 0x263   :  { %1396 = vmatpush3.bf16.xpose.msk.msra.mxu1 %vm1648_vm3, %v1378_v12  ;;  %1362 = vmatprep.mubr.msk.f32.mxu1 %vm1539_vm2, %v1540_v37 }
 0x266   :  { %1356 = vmatmul.mubr.msk.f32.vlgmr.msra.gmra.mrb[10].mxu0 %vm527_vm1, %v1541_v15 }
 0x26a   :  { %1363 = vmatmul.mubr.msk.f32.vlgmr.msra.gmra.mrb[10].mxu1 %vm527_vm1, %v1541_v15 }
 0x31a   :  { %v651_v16 = vpop.f32.mrb[4].mxu0 }
 0x31b   :  { %v1315_v17 = vpop.f32.mrb[5].mxu0 }
 0x325   :  { %v730_v18 = vpop.f32.mrb[4].mxu1 }
 0x326   :  { %v1322_v19 = vpop.f32.mrb[5].mxu1 }
 0x329   :  { %v809_v20 = vpop.f32.mrb[6].mxu0 }
 0x32a   :  { %v1329_v21 = vpop.f32.mrb[7].mxu0 }
 0x32d   :  { %v888_v22 = vpop.f32.mrb[6].mxu1 }
 0x32e   :  { %v1336_v23 = vpop.f32.mrb[7].mxu1 }
 0x331   :  { %v961_v24 = vpop.f32.mrb[8].mxu0 }
 0x332   :  { %1424 = vrcp.f32 %v961_v24  ;;  %v1343_v26 = vpop.f32.mrb[9].mxu0 }
 0x335   :  { %v1031_v28 = vpop.f32.mrb[8].mxu1 }
 0x336   :  { %1426 = vrcp.f32 %v1031_v28  ;;  %v1350_v29 = vpop.f32.mrb[9].mxu1 }
 0x339   :  { %v1101_v31 = vpop.f32.mrb[10].mxu0 }
 0x33a   :  { %1428 = vrcp.f32 %v1101_v31  ;;  %v1357_v32 = vpop.f32.mrb[11].mxu0 }
 0x33c   :  { %v1425_v33 = vpop.eup %1424 }
 0x33d   :  { %v1182_v34 = vrot.slane %v1425_v33, %v1181_v30  ;;  %v1171_v35 = vpop.f32.mrb[10].mxu1 }
 0x33e   :  { %1430 = vrcp.f32 %v1171_v35  ;;  %v1364_v36 = vpop.f32.mrb[11].mxu1 }
 0x33f   :  { %v1195_v37 = vmul.f32 %v1182_v34, %v651_v16 }
 0x340   :  { %v1427_v38 = vpop.eup %1426 }
 0x341   :  { %v1186_v39 = vrot.slane %v1427_v38, %v1181_v30  ;;  %1199 = vst.msk [vmem:[#allocation8] sm:$0xff] %vm527_vm1, %v1195_v37 }
 0x343   :  { %v1196_v40 = vmul.f32 %v1186_v39, %v730_v18 }
 0x344   :  { %v1429_v41 = vpop.eup %1428 }
 0x345   :  { %v1190_v42 = vrot.slane %v1429_v41, %v1181_v30  ;;  %1200 = vst.msk [vmem:[#allocation8 + $0x8] sm:$0xff] %vm527_vm1, %v1196_v40 }
 0x347   :  { %v1197_v43 = vmul.f32 %v1190_v42, %v809_v20 }
 0x348   :  { %v1431_v44 = vpop.eup %1430 }
 0x349   :  { %v1194_v45 = vrot.slane %v1431_v44, %v1181_v30  ;;  %1201 = vst.msk [vmem:[#allocation8 + $0x10] sm:$0xff] %vm527_vm1, %v1197_v43 }
 0x34b   :  { %v1198_v46 = vmul.f32 %v1194_v45, %v888_v22 }
 0x34d   :  { %1202 = vst.msk [vmem:[#allocation8 + $0x18] sm:$0xff] %vm527_vm1, %v1198_v46 }
 0x34e   :  { %1515 = shalt.err (!%p1512_p10)
}
 0x34f   :  { %s1516_s7 = scalar_lea.hbm %s1716_s3, 512 }
 0x350   :  { %p1517_p11 = scmp.ne.s32.totalorder %s1716_s3, %s1516_s7  ;;  %p1520_p12 = scmp.lt.u32.totalorder %s1516_s7, %s1716_s3 }
 0x352   :  { %p1522_p13 = pnand %p1520_p12, %p1517_p11 }
 0x354   :  { %1525 = shalt.err (!%p1522_p13)
}
 0x355   :  { %1214 = dma.vmem_to_hbm [thread:$0]  %s1209_s18, 512, %s1716_s3, [#allocation4], %s1535_s29, %s1535_s29, %s1536_s30  }
 0x356   :  { %1530 = dma.done.wait [#allocation4], 512  }
 0x357   :  { %1531 = vsyncadd [#allocation4], 4294966784 }
 0x358   :  { %1218 = vsyncpa [#allocation3], 1 }
 0x359   :  { %1219 = vsyncpa [#allocation6], 1 }
 0x35a   :  { %1220 = vsyncpa [#allocation4], 1 }

</bundles_post_ra>
